<compile_context>
chip_gen: v7x
topology: tpu7x:2x2x1
jax: 0.10.0
libtpu: 0.0.40
codegen_flags: <defaults>
</compile_context>

<pallas_src>
import jax
import jax.numpy as jnp
from jax.experimental import pallas as pl
from jax.experimental.pallas import tpu as pltpu

_NEG_SLOPE = 0.01  # nn.LeakyReLU() default negative_slope
_ITEMSIZE = 4      # f32


def _qd_kernel(z_ref, w_ref, b_ref, o_ref):
    # LeakyReLU on the VPU, matmul on the MXU (f32 accumulation), bias add.
    h = z_ref[...]
    h = jnp.where(h > 0, h, jnp.float32(_NEG_SLOPE) * h)
    acc = jnp.dot(h, w_ref[...], preferred_element_type=jnp.float32)
    o_ref[...] = (acc + b_ref[...]).astype(o_ref.dtype)


def _round_up(x, m):
    return ((x + m - 1) // m) * m


def qd_forward(zd, weight_t, bias, *, max_batch_tile=4096,
               single_block_bytes=8 << 20, tile_budget_bytes=8 << 20):
    """forward(zd) = LeakyReLU(zd) @ weight_t + bias

    zd:       [B, z_dim]     f32
    weight_t: [z_dim, d_dim] f32  (transposed vs PyTorch's [d_dim, z_dim])
    bias:     [d_dim]        f32
    """
    B, z_dim = zd.shape
    d_dim = weight_t.shape[1]
    bias2d = bias.reshape(1, d_dim)

    row_bytes = _ITEMSIZE * (z_dim + d_dim)            # zd row + out row
    weight_bytes = _ITEMSIZE * (z_dim * d_dim + d_dim)  # weight + bias
    total_bytes = weight_bytes + B * row_bytes

    cost = pl.CostEstimate(
        flops=2 * B * z_dim * d_dim,
        transcendentals=0,
        bytes_accessed=_ITEMSIZE * (B * z_dim + z_dim * d_dim + d_dim + B * d_dim),
    )

    if total_bytes <= single_block_bytes:
        # Single block, no grid: whole problem lives in VMEM for one
        # invocation. No padding needed: full-array blocks are always legal.
        return pl.pallas_call(
            _qd_kernel,
            out_shape=jax.ShapeDtypeStruct((B, d_dim), jnp.float32),
            in_specs=[
                pl.BlockSpec(memory_space=pltpu.MemorySpace.VMEM),
                pl.BlockSpec(memory_space=pltpu.MemorySpace.VMEM),
                pl.BlockSpec(memory_space=pltpu.MemorySpace.VMEM),
            ],
            out_specs=pl.BlockSpec(memory_space=pltpu.MemorySpace.VMEM),
            cost_estimate=cost,
        )(zd, weight_t, bias2d)

    # ---- Batch-tiled path for large B ----
    # Pad B only to a multiple of 8 (sublane alignment of the tile dim).
    Bp = _round_up(B, 8)
    zd_p = jnp.pad(zd, ((0, Bp - B), (0, 0))) if Bp != B else zd

    # Tile size: as large as the VMEM budget allows (double-buffered in+out
    # blocks), capped at max_batch_tile, and small enough to leave >= ~4 grid
    # steps so the "parallel" axis feeds both v7x TensorCores.
    per_row_buffered = 2 * row_bytes
    tile_cap = max(8, (tile_budget_bytes // per_row_buffered) // 8 * 8)
    tile = min(max_batch_tile, tile_cap)
    tile = min(tile, max(8, _round_up(pl.cdiv(Bp, 4), 8)))
    grid = pl.cdiv(Bp, tile)

    # Raise the scoped-VMEM limit only if the block set would exceed the
    # v5e default (16 MiB); otherwise leave compiler defaults alone.
    block_bytes = 2 * _ITEMSIZE * (
        tile * z_dim + tile * d_dim + z_dim * d_dim + d_dim)
    cp_kwargs = dict(dimension_semantics=("parallel",))
    if block_bytes > (12 << 20):
        cp_kwargs["vmem_limit_bytes"] = int(min(block_bytes * 2, 100 << 20))

    # Note: with a cdiv grid the last (partial) block reads rows past Bp as
    # garbage; those results only land in out-of-bounds output rows (dropped)
    # and rows in [B, Bp) which are sliced off below.
    out = pl.pallas_call(
        _qd_kernel,
        out_shape=jax.ShapeDtypeStruct((Bp, d_dim), jnp.float32),
        grid=(grid,),
        in_specs=[
            pl.BlockSpec((tile, z_dim), lambda i: (i, 0)),
            pl.BlockSpec((z_dim, d_dim), lambda i: (0, 0)),
            pl.BlockSpec((1, d_dim), lambda i: (0, 0)),
        ],
        out_specs=pl.BlockSpec((tile, d_dim), lambda i: (i, 0)),
        compiler_params=pltpu.CompilerParams(**cp_kwargs),
        cost_estimate=cost,
    )(zd_p, weight_t, bias2d)

    return out[:B] if Bp != B else out


def init_qd_params(key, z_dim, d_dim):
    """Matches the PyTorch module init: xavier_uniform_ on fc1.weight
    (torch layout [d_dim, z_dim]), bias zeroed."""
    bound = (6.0 / (z_dim + d_dim)) ** 0.5
    w_torch_layout = jax.random.uniform(
        key, (d_dim, z_dim), dtype=jnp.float32, minval=-bound, maxval=bound
    )
    weight_t = w_torch_layout.T  # [z_dim, d_dim] for row-major matmul
    bias = jnp.zeros((d_dim,), dtype=jnp.float32)
    return weight_t, bias


def qd_reference(zd, weight_t, bias):
    h = jnp.where(zd > 0, zd, _NEG_SLOPE * zd)
    return h @ weight_t + bias


if __name__ == "__main__":
    key = jax.random.PRNGKey(0)
    k_in, k_w, k_big = jax.random.split(key, 3)

    # Small shapes consistent with the module (batch=8, z_dim=32, d_dim=64).
    B, z_dim, d_dim = 8, 32, 64
    zd = jax.random.normal(k_in, (B, z_dim), dtype=jnp.float32)
    weight_t, bias = init_qd_params(k_w, z_dim, d_dim)

    out = jax.block_until_ready(qd_forward(zd, weight_t, bias))
    ref = qd_reference(zd, weight_t, bias)
    assert out.shape == (B, d_dim)
    assert jnp.allclose(out, ref, atol=1e-5, rtol=1e-5)

    # Exercise the batch-tiled ("parallel") path, including a partial last
    # block, by forcing the tiled branch with single_block_bytes=0.
    B_big = 1000
    zd_big = jax.random.normal(k_big, (B_big, z_dim), dtype=jnp.float32)
    out_big = jax.block_until_ready(
        qd_forward(zd_big, weight_t, bias, single_block_bytes=0)
    )
    ref_big = qd_reference(zd_big, weight_t, bias)
    assert out_big.shape == (B_big, d_dim)
    assert jnp.allclose(out_big, ref_big, atol=1e-5, rtol=1e-5)

    print("KERNEL_OK")
</pallas_src>

<mosaic_0001>
module attributes {stable_mosaic.version = 11 : i64} {
  func.func @_qd_kernel(%arg0: memref<8x32xf32, #tpu.memory_space<vmem>>, %arg1: memref<32x64xf32, #tpu.memory_space<vmem>>, %arg2: memref<1x64xf32, #tpu.memory_space<vmem>>, %arg3: memref<8x64xf32, #tpu.memory_space<vmem>>) attributes {dimension_semantics = [], scalar_prefetch = 0 : i64, scratch_operands = 0 : i64, tpu.core_type = #tpu.core_type<tc>} {
    %c0 = arith.constant 0 : index
    %c0_0 = arith.constant 0 : index
    %0 = vector.load %arg0[%c0, %c0_0] : memref<8x32xf32, #tpu.memory_space<vmem>>, vector<8x32xf32>
    %cst = arith.constant 0.000000e+00 : f32
    %1 = vector.broadcast %cst : f32 to vector<8x32xf32>
    %2 = arith.cmpf ogt, %0, %1 : vector<8x32xf32>
    %cst_1 = arith.constant 0.00999999977 : f32
    %3 = vector.broadcast %cst_1 : f32 to vector<8x32xf32>
    %4 = arith.mulf %3, %0 : vector<8x32xf32>
    %5 = arith.select %2, %0, %4 : vector<8x32xi1>, vector<8x32xf32>
    %c0_2 = arith.constant 0 : index
    %c0_3 = arith.constant 0 : index
    %6 = vector.load %arg1[%c0_2, %c0_3] : memref<32x64xf32, #tpu.memory_space<vmem>>, vector<32x64xf32>
    %cst_4 = arith.constant dense<0.000000e+00> : vector<8x64xf32>
    %7 = tpu.matmul %5, %6, %cst_4 {dimension_numbers = #tpu.dot_dimension_numbers<[1], [0], [0], [1], [0, 0, 1, 1], [], []>} : vector<8x32xf32>, vector<32x64xf32>, vector<8x64xf32> -> vector<8x64xf32>
    %c0_5 = arith.constant 0 : index
    %c0_6 = arith.constant 0 : index
    %8 = vector.load %arg2[%c0_5, %c0_6] : memref<1x64xf32, #tpu.memory_space<vmem>>, vector<1x64xf32>
    %9 = vector.broadcast %8 : vector<1x64xf32> to vector<8x64xf32>
    %10 = arith.addf %7, %9 : vector<8x64xf32>
    %c0_7 = arith.constant 0 : index
    %c0_8 = arith.constant 0 : index
    %11 = vector.load %arg3[%c0_7, %c0_8] : memref<8x64xf32, #tpu.memory_space<vmem>>, vector<8x64xf32>
    tpu.vector_store %arg3[%c0_7, %c0_8], %10 {strides = array<i32>} : memref<8x64xf32, #tpu.memory_space<vmem>>, vector<8x64xf32>,
    return
  }
}

</mosaic_0001>

<bundles_post_ra>
// kernel: tpu_custom_call.1
= control target key start
LH: loop header
LB: loop body
LE: loop exit
PB: predicated region body
PF: predicated region fallthrough
CT: control target
= control target key end

     0   :  { %8 = vsyncpa [#allocation3], 0  ;;  %s326_s0 = inlined_call_operand.hbm [shape: f32[8,32], index: 0, kind: input, shape index: {}]   ;;  %s327_s1 = inlined_call_operand.hbm [shape: f32[32,64], index: 1, kind: input, shape index: {}]   ;;  %s328_s2 = inlined_call_operand.vmem [shape: f32[1,64], index: 2, kind: input, shape index: {}]   ;;  %s329_s3 = inlined_call_operand.hbm [shape: f32[8,64], index: 3, kind: output, shape index: {}]  }
   0x1   :  { %9 = vsyncpa [#allocation6], 0 }
   0x2   :  { %10 = vsyncpa [#allocation4], 0  ;;  %s252_s12 = smov [#allocation2]   ;;  %s253_s14 = smov [#allocation5]  }
   0x3   :  { %s17_s13 = sshll.u32 %s252_s12, 4  ;;  %s26_s15 = sshll.u32 %s253_s14, 4  ;;  %s18_s13 = int_to_ptr.vmem [resolvable:$true] %s17_s13  ;;  %s280_s15 = int_to_ptr.vmem [resolvable:$true] %s26_s15 }
   0x4   :  { %s180_s18 = scalar_lea.hbm %s326_s0, 128 }
   0x5   :  { %p181_p0 = scmp.ne.s32.totalorder %s326_s0, %s180_s18  ;;  %p184_p1 = scmp.lt.u32.totalorder %s180_s18, %s326_s0 }
   0x7   :  { %p186_p2 = pnand %p184_p1, %p181_p0 }
   0x9   :  { %189 = shalt.err (!%p186_p2)
}
   0xa   :  { %s190_s23 = scalar_lea.vmem %s18_s13, 128  ;;  %p195_p4 = scmp.lt.s32.totalorder %s18_s13, %s18_s13 }
   0xb   :  { %p191_p3 = scmp.ne.s32.totalorder %s18_s13, %s190_s23  ;;  %p196_p5 = scmp.lt.s32.totalorder %s190_s23, %s190_s23 }
   0xd   :  { %p197_p6 = por %p196_p5, %p195_p4 }
   0xf   :  { %p198_p7 = pnand %p197_p6, %p191_p3 }
  0x11   :  { %201 = shalt.err (!%p198_p7)
}
  0x12   :  { %20 = dma.hbm_to_vmem [thread:$0]  %s326_s0, 128, %s18_s13, [#allocation3]  }
  0x13   :  { %s202_s28 = scalar_lea.hbm %s327_s1, 512 }
  0x14   :  { %p203_p8 = scmp.ne.s32.totalorder %s327_s1, %s202_s28  ;;  %p206_p9 = scmp.lt.u32.totalorder %s202_s28, %s327_s1 }
  0x16   :  { %p208_p10 = pnand %p206_p9, %p203_p8 }
  0x18   :  { %211 = shalt.err (!%p208_p10)
}
  0x19   :  { %s212_s6 = scalar_lea.vmem %s280_s15, 512  ;;  %p217_p12 = scmp.lt.s32.totalorder %s280_s15, %s280_s15 }
  0x1a   :  { %p213_p11 = scmp.ne.s32.totalorder %s280_s15, %s212_s6  ;;  %p218_p13 = scmp.lt.s32.totalorder %s212_s6, %s212_s6 }
  0x1c   :  { %p219_p0 = por %p218_p13, %p217_p12 }
  0x1e   :  { %p220_p1 = pnand %p219_p0, %p213_p11 }
  0x20   :  { %223 = shalt.err (!%p220_p1)
}
  0x21   :  { %s254_s0 = smov 128   ;;  %s255_s7 = smov 8  }
  0x22   :  { %32 = dma.hbm_to_vmem [thread:$0]  %s327_s1, 512, %s280_s15, [#allocation6], %s254_s0, %s254_s0, %s255_s7  }
  0x23   :  { %246 = dma.done.wait [#allocation3], 128  }
  0x24   :  { %247 = vsyncadd [#allocation3], 4294967168 }
  0x25   :  { %248 = dma.done.wait [#allocation6], 512  }
  0x26   :  { %249 = vsyncadd [#allocation6], 4294966784  ;;  %v256_v0 = vmov 0.0|0.0   ;;  %vm257_vm0 = vmmov 0   ;;  %v258_v1 = vmov 0.0   ;;  %v45_v2 = vld [vmem:[#allocation5] sm:$0xff] }
  0x27   :  { %166 = vmatprep.subr.bf16.mxu0 %v256_v0  ;;  %163 = vmatprep.mubr.msk.f32.mxu0 %vm257_vm0, %v258_v1  ;;  %v46_v3 = vld [vmem:[#allocation5 + $0x8] sm:$0xff]  ;;  %v47_v4 = vld [vmem:[#allocation5 + $0x10] sm:$0xff]  ;;  %v48_v6 = vld [vmem:[#allocation5 + $0x18] sm:$0xff]  ;;  %vm56_vm2 = vcmask 261120   ;;  %s259_s11 = smov [#allocation7]   ;;  %vm130_vm3 = vcmask 523264  }
  0x28   :  { %v167_v5 = vpack.c.bf16 %v46_v3, %v45_v2  ;;  %v41_v7 = vld [vmem:[#allocation2] sm:$0xff]  ;;  %v170_v8 = vpack.c.bf16 %v48_v6, %v47_v4  ;;  %s138_s12 = sshll.u32 %s259_s11, 4  ;;  %s139_s12 = int_to_ptr.vmem [resolvable:$true] %s138_s12 }
  0x29   :  { %v43_v9 = vmul.f32 0.01, %v41_v7  ;;  %vm42_vm1 = vcmp.gt.f32.partialorder %v41_v7, 0.0  ;;  %v148_v11 = vld [vmem:[%s328_s2] ss:$0 sm:$0xff]  ;;  %s224_s13 = scalar_lea.vmem %s139_s12, 128  ;;  %p229_p3 = scmp.lt.s32.totalorder %s139_s12, %s139_s12 }
  0x2a   :  { %168 = vmatpush3.bf16.msra.mxu0 %v167_v5  ;;  %p225_p2 = scmp.ne.s32.totalorder %s139_s12, %s224_s13  ;;  %p230_p4 = scmp.lt.s32.totalorder %s224_s13, %s224_s13 }
  0x2b   :  { %169 = vmatprep.subr.bf16.mxu0 %v256_v0  ;;  %v44_v10 = vsel %vm42_vm1, %v41_v7, %v43_v9 }
  0x2c   :  { %p231_p5 = por %p230_p4, %p229_p3 }
  0x2e   :  { %171 = vmatpush3.bf16.msra.mxu0 %v170_v8  ;;  %p232_p6 = pnand %p231_p5, %p225_p2 }
  0x31   :  { %164 = vmatmul.mubr.msk.f32.vlgmr.msra.gmra.mrb[0].mxu0 %vm56_vm2, %v44_v10 }
 0x104   :  { %v126_v12 = vpop.f32.mrb[0].mxu0 }
 0x105   :  { %v127_v13 = vadd.f32 %v148_v11, %v126_v12  ;;  %v165_v14 = vpop.f32.mrb[1].mxu0 }
 0x107   :  { %131 = vst.msk [vmem:[#allocation7] sm:$0xff] %vm130_vm3, %v127_v13 }
 0x108   :  { %235 = shalt.err (!%p232_p6)
}
 0x109   :  { %s236_s16 = scalar_lea.hbm %s329_s3, 128 }
 0x10a   :  { %p237_p7 = scmp.ne.s32.totalorder %s329_s3, %s236_s16  ;;  %p240_p8 = scmp.lt.u32.totalorder %s236_s16, %s329_s3 }
 0x10c   :  { %p242_p9 = pnand %p240_p8, %p237_p7 }
 0x10e   :  { %245 = shalt.err (!%p242_p9)
}
 0x10f   :  { %141 = dma.vmem_to_hbm [thread:$0]  %s139_s12, 128, %s329_s3, [#allocation4]  }
 0x110   :  { %250 = dma.done.wait [#allocation4], 128  }
 0x111   :  { %251 = vsyncadd [#allocation4], 4294967168 }
 0x112   :  { %145 = vsyncpa [#allocation3], 1 }
 0x113   :  { %146 = vsyncpa [#allocation6], 1 }
 0x114   :  { %147 = vsyncpa [#allocation4], 1 }

</bundles_post_ra>
